<compile_context>
chip_gen: v7x
topology: tpu7x:2x2x1
jax: 0.10.0
libtpu: 0.0.40
codegen_flags: <defaults>
</compile_context>

<pallas_src>
import math

import jax
import jax.numpy as jnp
from jax.experimental import pallas as pl
from jax.experimental.pallas import tpu as pltpu

_LANES = 128
_TARGET_TILE_BYTES = 4 * 1024 * 1024     # ~4 MiB per block of I/O dtype
_VMEM_LIMIT_BYTES = 32 * 1024 * 1024     # in+out, double-buffered 4 MiB blocks = 16 MiB + headroom

# atan(z) ~= z * P(z^2) on [0, 1], degree-11 odd minimax, |err| <~ 2e-6.
# Coefficients pre-scaled by 1/pi so the kernel directly produces atan(z)/pi.
_ATAN_P = tuple(c / math.pi for c in
                (0.99997726, -0.33262347, 0.19354346,
                 -0.11643287, 0.05265332, -0.01172120))

# cos(r) ~= even Taylor polynomial up to r^14 on [-pi, pi], |err| <~ 5e-6.
_COS_P = (1.0, -1.0 / 2.0, 1.0 / 24.0, -1.0 / 720.0, 1.0 / 40320.0,
          -1.0 / 3628800.0, 1.0 / 479001600.0, -1.0 / 87178291200.0)

_INV_TWO_PI = 1.0 / (2.0 * math.pi)
_TWO_PI_HI = 6.28125                       # few-mantissa-bit piece (k*HI exact for |k| < 2^15)
_TWO_PI_LO = 2.0 * math.pi - 6.28125       # Cody-Waite low piece


def _sontag_kernel(alpha: float):
    """Elementwise Sontag sigmoid (computes in f32, stores in the I/O dtype)."""
    inv_alpha = 1.0 / float(alpha)

    def kernel(x_ref, o_ref):
        x = x_ref[...].astype(jnp.float32)
        # TODO(synk): on v6e/v7x a bf16-compute path (when o_ref.dtype is bf16)
        # would double VALU throughput; kept f32 so v5e (no bf16 VPU/EUP) and
        # the tight f32 tolerance both stay safe.

        # ---- 1/(1 + x^2): EUP approximate reciprocal + one Newton step. ----
        x2 = x * x
        den = 1.0 + x2
        inv0 = pl.reciprocal(den, approx=True)
        inv_den = inv0 * (2.0 - den * inv0)

        # ---- atan(x)/pi: odd minimax polynomial with 1/|x| range reduction. ----
        ax = jnp.abs(x)
        big = ax > 1.0
        safe = jnp.maximum(ax, 1.0)
        rcp = pl.reciprocal(safe, approx=True)     # EUP seed for 1/|x|
        rcp = rcp * (2.0 - safe * rcp)             # Newton step 1
        rcp = rcp * (2.0 - safe * rcp)             # Newton step 2 (kills seed coarseness)
        z = jnp.where(big, rcp, ax)                # z in [0, 1]
        z2 = z * z
        p = _ATAN_P[5]
        for coef in _ATAN_P[4::-1]:
            p = p * z2 + coef
        q = z * p                                  # atan(z)/pi
        q = jnp.where(big, 0.5 - q, q)             # atan(|x|)/pi
        atan_term = jnp.where(x < 0.0, -q, q)      # atan(x)/pi

        # ---- cos(x): Cody-Waite reduction to [-pi, pi] + even Taylor poly. ----
        # TODO(synk): single-stage reduction loses accuracy only for |x| >~ 1e5,
        # far outside any activation range.
        k = jnp.floor(x * _INV_TWO_PI + 0.5)
        r = x - k * _TWO_PI_HI
        r = r - k * _TWO_PI_LO
        r2 = r * r
        cs = _COS_P[7]
        for coef in _COS_P[6::-1]:
            cs = cs * r2 + coef                    # cs == cos(x)

        o_ref[...] = (atan_term + 0.5 + cs * (inv_alpha * inv_den)).astype(o_ref.dtype)

    return kernel


def sigmoide_sontag(x: jax.Array, alpha: float = 100.0) -> jax.Array:
    """Pallas TPU implementation of SigmoideSontag.forward (any shape / float dtype)."""
    orig_shape = x.shape
    orig_dtype = x.dtype
    n = x.size
    itemsize = jnp.dtype(orig_dtype).itemsize
    # dtype-aware sublane multiple: 8 (f32), 16 (bf16/f16), 32 (int8/fp8).
    sublane_mult = max(8, 32 // max(itemsize, 1))

    # ---- Present the data as a lane-dense [rows, 128] slab. ----
    x_flat = x.reshape(-1)
    if n % _LANES == 0:
        # Fast path: pure reshape, no pad / no tail slice (no extra HBM passes).
        rows = n // _LANES
        padded = False
        x2d = x_flat.reshape(rows, _LANES)
    else:
        # TODO(synk): the pad + tail-slice add extra HBM passes for ragged sizes;
        # the true fix is an in-kernel masked edge block over the raw 1-D buffer
        # (manual DMA), which BlockSpec tiling cannot express for a
        # non-multiple-of-128 flat array.
        rows = pl.cdiv(n, _LANES)
        padded = True
        x2d = jnp.pad(x_flat, (0, rows * _LANES - n)).reshape(rows, _LANES)

    # ---- Row tile: big (~4 MiB) streaming blocks, but always >= 2 blocks
    #      (evenly split) once the input is non-trivial so both v7x TCs work. ----
    target_rows = _TARGET_TILE_BYTES // (_LANES * itemsize)
    target_rows = max(sublane_mult, (target_rows // sublane_mult) * sublane_mult)
    if rows <= 2 * sublane_mult:
        tile_rows = rows                       # tiny input: one full-extent block
    else:
        half_rows = pl.cdiv(pl.cdiv(rows, 2), sublane_mult) * sublane_mult
        tile_rows = min(target_rows, half_rows)
    num_blocks = pl.cdiv(rows, tile_rows)

    cost = pl.CostEstimate(
        flops=60 * n,              # polynomial + range-reduction VALU work
        transcendentals=2 * n,     # two EUP reciprocals per element
        bytes_accessed=2 * n * itemsize,
    )

    out2d = pl.pallas_call(
        _sontag_kernel(float(alpha)),
        out_shape=jax.ShapeDtypeStruct((rows, _LANES), orig_dtype),
        grid_spec=pltpu.PrefetchScalarGridSpec(
            num_scalar_prefetch=0,
            grid=(num_blocks,),
            in_specs=[pl.BlockSpec((tile_rows, _LANES), lambda i: (i, 0))],
            out_specs=pl.BlockSpec((tile_rows, _LANES), lambda i: (i, 0)),
        ),
        compiler_params=pltpu.CompilerParams(
            dimension_semantics=("parallel",),
            vmem_limit_bytes=_VMEM_LIMIT_BYTES,
        ),
        cost_estimate=cost,
    )(x2d)

    if not padded:
        return out2d.reshape(orig_shape)
    return out2d.reshape(-1)[:n].reshape(orig_shape)


def _reference(x, alpha=100.0):
    xf = x.astype(jnp.float32)
    return jnp.arctan(xf) / math.pi + 0.5 + jnp.cos(xf) / (alpha * (1.0 + xf * xf))


if __name__ == "__main__":
    key = jax.random.PRNGKey(0)

    # Primary case: NCHW activation map (n % 128 == 0 -> fast path, no pad/slice).
    x = jax.random.normal(key, (2, 4, 16, 16), dtype=jnp.float32) * 3.0
    out = jax.block_until_ready(sigmoide_sontag(x, alpha=100.0))
    assert out.shape == x.shape and out.dtype == x.dtype
    assert jnp.allclose(out, _reference(x), atol=1e-4, rtol=1e-5), "f32 mismatch"

    # Larger case: exercises the >=2 "parallel" blocks (ragged last block masked).
    x_big = jax.random.normal(jax.random.PRNGKey(3), (5, 8, 128), dtype=jnp.float32) * 5.0
    out_big = jax.block_until_ready(sigmoide_sontag(x_big, alpha=100.0))
    assert out_big.shape == x_big.shape
    assert jnp.allclose(out_big, _reference(x_big), atol=1e-4, rtol=1e-5), "multi-block mismatch"

    # Ragged case: total size not a multiple of 128 (exercises the padded path).
    x_odd = jax.random.normal(jax.random.PRNGKey(1), (3, 5, 7), dtype=jnp.float32) * 3.0
    out_odd = jax.block_until_ready(sigmoide_sontag(x_odd, alpha=100.0))
    assert out_odd.shape == x_odd.shape
    assert jnp.allclose(out_odd, _reference(x_odd), atol=1e-4, rtol=1e-5), "ragged mismatch"

    # bf16 I/O case: compute stays f32 inside the kernel.
    x_bf16 = (jax.random.normal(jax.random.PRNGKey(2), (2, 4, 16, 16)) * 3.0).astype(jnp.bfloat16)
    out_bf16 = jax.block_until_ready(sigmoide_sontag(x_bf16, alpha=100.0))
    assert out_bf16.dtype == jnp.bfloat16 and out_bf16.shape == x_bf16.shape
    assert jnp.allclose(out_bf16.astype(jnp.float32), _reference(x_bf16), atol=1e-2), "bf16 mismatch"

    print("KERNEL_OK")
</pallas_src>

<mosaic_0001>
module attributes {stable_mosaic.version = 11 : i64} {
  func.func @kernel(%arg0: i32, %arg1: memref<16x128xf32, #tpu.memory_space<vmem>>, %arg2: memref<16x128xf32, #tpu.memory_space<vmem>>) attributes {dimension_semantics = [#tpu.dimension_semantics<parallel>], iteration_bounds = array<i64: 1>, scalar_prefetch = 0 : i64, scratch_operands = 0 : i64, tpu.core_type = #tpu.core_type<tc>, window_params = [{transform_indices = @transform_0, window_bounds = array<i64: 16, 128>}, {transform_indices = @transform_1, window_bounds = array<i64: 16, 128>}]} {
    %c0 = arith.constant 0 : index
    %c0_0 = arith.constant 0 : index
    %0 = vector.load %arg1[%c0, %c0_0] : memref<16x128xf32, #tpu.memory_space<vmem>>, vector<16x128xf32>
    %1 = arith.mulf %0, %0 : vector<16x128xf32>
    %cst = arith.constant 1.000000e+00 : f32
    %2 = vector.broadcast %cst : f32 to vector<16x128xf32>
    %3 = arith.addf %2, %1 : vector<16x128xf32>
    %4 = tpu.reciprocal %3 {approx = true} : vector<16x128xf32> -> vector<16x128xf32>
    %5 = arith.mulf %3, %4 : vector<16x128xf32>
    %cst_1 = arith.constant 2.000000e+00 : f32
    %6 = vector.broadcast %cst_1 : f32 to vector<16x128xf32>
    %7 = arith.subf %6, %5 : vector<16x128xf32>
    %8 = arith.mulf %4, %7 : vector<16x128xf32>
    %9 = math.absf %0 : vector<16x128xf32>
    %cst_2 = arith.constant 1.000000e+00 : f32
    %10 = vector.broadcast %cst_2 : f32 to vector<16x128xf32>
    %11 = arith.cmpf ogt, %9, %10 : vector<16x128xf32>
    %cst_3 = arith.constant 1.000000e+00 : f32
    %12 = vector.broadcast %cst_3 : f32 to vector<16x128xf32>
    %13 = arith.maximumf %9, %12 : vector<16x128xf32>
    %14 = tpu.reciprocal %13 {approx = true} : vector<16x128xf32> -> vector<16x128xf32>
    %15 = arith.mulf %13, %14 : vector<16x128xf32>
    %cst_4 = arith.constant 2.000000e+00 : f32
    %16 = vector.broadcast %cst_4 : f32 to vector<16x128xf32>
    %17 = arith.subf %16, %15 : vector<16x128xf32>
    %18 = arith.mulf %14, %17 : vector<16x128xf32>
    %19 = arith.mulf %13, %18 : vector<16x128xf32>
    %cst_5 = arith.constant 2.000000e+00 : f32
    %20 = vector.broadcast %cst_5 : f32 to vector<16x128xf32>
    %21 = arith.subf %20, %19 : vector<16x128xf32>
    %22 = arith.mulf %18, %21 : vector<16x128xf32>
    %23 = arith.select %11, %22, %9 : vector<16x128xi1>, vector<16x128xf32>
    %24 = arith.mulf %23, %23 : vector<16x128xf32>
    %cst_6 = arith.constant -0.00373097393 : f32
    %25 = vector.broadcast %cst_6 : f32 to vector<16x128xf32>
    %26 = arith.mulf %25, %24 : vector<16x128xf32>
    %cst_7 = arith.constant 0.0167600717 : f32
    %27 = vector.broadcast %cst_7 : f32 to vector<16x128xf32>
    %28 = arith.addf %26, %27 : vector<16x128xf32>
    %29 = arith.mulf %28, %24 : vector<16x128xf32>
    %cst_8 = arith.constant -0.0370617323 : f32
    %30 = vector.broadcast %cst_8 : f32 to vector<16x128xf32>
    %31 = arith.addf %29, %30 : vector<16x128xf32>
    %32 = arith.mulf %31, %24 : vector<16x128xf32>
    %cst_9 = arith.constant 6.160680e-02 : f32
    %33 = vector.broadcast %cst_9 : f32 to vector<16x128xf32>
    %34 = arith.addf %32, %33 : vector<16x128xf32>
    %35 = arith.mulf %34, %24 : vector<16x128xf32>
    %cst_10 = arith.constant -0.10587734 : f32
    %36 = vector.broadcast %cst_10 : f32 to vector<16x128xf32>
    %37 = arith.addf %35, %36 : vector<16x128xf32>
    %38 = arith.mulf %37, %24 : vector<16x128xf32>
    %cst_11 = arith.constant 0.318302661 : f32
    %39 = vector.broadcast %cst_11 : f32 to vector<16x128xf32>
    %40 = arith.addf %38, %39 : vector<16x128xf32>
    %41 = arith.mulf %23, %40 : vector<16x128xf32>
    %cst_12 = arith.constant 5.000000e-01 : f32
    %42 = vector.broadcast %cst_12 : f32 to vector<16x128xf32>
    %43 = arith.subf %42, %41 : vector<16x128xf32>
    %44 = arith.select %11, %43, %41 : vector<16x128xi1>, vector<16x128xf32>
    %cst_13 = arith.constant 0.000000e+00 : f32
    %45 = vector.broadcast %cst_13 : f32 to vector<16x128xf32>
    %46 = arith.cmpf olt, %0, %45 : vector<16x128xf32>
    %cst_14 = arith.constant 0.000000e+00 : f32
    %47 = vector.broadcast %cst_14 : f32 to vector<16x128xf32>
    %48 = arith.subf %47, %44 : vector<16x128xf32>
    %49 = arith.select %46, %48, %44 : vector<16x128xi1>, vector<16x128xf32>
    %cst_15 = arith.constant 0.159154937 : f32
    %50 = vector.broadcast %cst_15 : f32 to vector<16x128xf32>
    %51 = arith.mulf %0, %50 : vector<16x128xf32>
    %cst_16 = arith.constant 5.000000e-01 : f32
    %52 = vector.broadcast %cst_16 : f32 to vector<16x128xf32>
    %53 = arith.addf %51, %52 : vector<16x128xf32>
    %54 = math.floor %53 : vector<16x128xf32>
    %cst_17 = arith.constant 6.281250e+00 : f32
    %55 = vector.broadcast %cst_17 : f32 to vector<16x128xf32>
    %56 = arith.mulf %54, %55 : vector<16x128xf32>
    %57 = arith.subf %0, %56 : vector<16x128xf32>
    %cst_18 = arith.constant 0.00193530717 : f32
    %58 = vector.broadcast %cst_18 : f32 to vector<16x128xf32>
    %59 = arith.mulf %54, %58 : vector<16x128xf32>
    %60 = arith.subf %57, %59 : vector<16x128xf32>
    %61 = arith.mulf %60, %60 : vector<16x128xf32>
    %cst_19 = arith.constant -1.14707454E-11 : f32
    %62 = vector.broadcast %cst_19 : f32 to vector<16x128xf32>
    %63 = arith.mulf %62, %61 : vector<16x128xf32>
    %cst_20 = arith.constant 2.08767559E-9 : f32
    %64 = vector.broadcast %cst_20 : f32 to vector<16x128xf32>
    %65 = arith.addf %63, %64 : vector<16x128xf32>
    %66 = arith.mulf %65, %61 : vector<16x128xf32>
    %cst_21 = arith.constant -2.755732E-7 : f32
    %67 = vector.broadcast %cst_21 : f32 to vector<16x128xf32>
    %68 = arith.addf %66, %67 : vector<16x128xf32>
    %69 = arith.mulf %68, %61 : vector<16x128xf32>
    %cst_22 = arith.constant 2.48015876E-5 : f32
    %70 = vector.broadcast %cst_22 : f32 to vector<16x128xf32>
    %71 = arith.addf %69, %70 : vector<16x128xf32>
    %72 = arith.mulf %71, %61 : vector<16x128xf32>
    %cst_23 = arith.constant -0.00138888892 : f32
    %73 = vector.broadcast %cst_23 : f32 to vector<16x128xf32>
    %74 = arith.addf %72, %73 : vector<16x128xf32>
    %75 = arith.mulf %74, %61 : vector<16x128xf32>
    %cst_24 = arith.constant 0.0416666679 : f32
    %76 = vector.broadcast %cst_24 : f32 to vector<16x128xf32>
    %77 = arith.addf %75, %76 : vector<16x128xf32>
    %78 = arith.mulf %77, %61 : vector<16x128xf32>
    %cst_25 = arith.constant -5.000000e-01 : f32
    %79 = vector.broadcast %cst_25 : f32 to vector<16x128xf32>
    %80 = arith.addf %78, %79 : vector<16x128xf32>
    %81 = arith.mulf %80, %61 : vector<16x128xf32>
    %cst_26 = arith.constant 1.000000e+00 : f32
    %82 = vector.broadcast %cst_26 : f32 to vector<16x128xf32>
    %83 = arith.addf %81, %82 : vector<16x128xf32>
    %cst_27 = arith.constant 5.000000e-01 : f32
    %84 = vector.broadcast %cst_27 : f32 to vector<16x128xf32>
    %85 = arith.addf %49, %84 : vector<16x128xf32>
    %cst_28 = arith.constant 0.00999999977 : f32
    %86 = vector.broadcast %cst_28 : f32 to vector<16x128xf32>
    %87 = arith.mulf %86, %8 : vector<16x128xf32>
    %88 = arith.mulf %83, %87 : vector<16x128xf32>
    %89 = arith.addf %85, %88 : vector<16x128xf32>
    %c0_29 = arith.constant 0 : index
    %c0_30 = arith.constant 0 : index
    %90 = vector.load %arg2[%c0_29, %c0_30] : memref<16x128xf32, #tpu.memory_space<vmem>>, vector<16x128xf32>
    tpu.vector_store %arg2[%c0_29, %c0_30], %89 {strides = array<i32>} : memref<16x128xf32, #tpu.memory_space<vmem>>, vector<16x128xf32>,
    return
  }
  func.func @transform_0(%arg0: i32) -> (i32, i32) {
    %c0_i32 = arith.constant 0 : i32
    %c0_i32_0 = arith.constant 0 : i32
    return %arg0, %c0_i32 : i32, i32
  }
  func.func @transform_1(%arg0: i32) -> (i32, i32) {
    %c0_i32 = arith.constant 0 : i32
    %c0_i32_0 = arith.constant 0 : i32
    return %arg0, %c0_i32 : i32, i32
  }
}

</mosaic_0001>

<bundles_post_ra>
// kernel: tpu_custom_call.1
= control target key start
LH: loop header
LB: loop body
LE: loop exit
PB: predicated region body
PF: predicated region fallthrough
CT: control target
= control target key end

     0   :  { %6 = vsyncpa [#allocation3], 0  ;;  %s320_s0 = inlined_call_operand.hbm [shape: f32[16,128], index: 0, kind: input, shape index: {}]   ;;  %s321_s1 = inlined_call_operand.hbm [shape: f32[16,128], index: 1, kind: output, shape index: {}]  }
   0x1   :  { %7 = vsyncpa [#allocation4], 0  ;;  %s224_s6 = smov [#allocation2]   ;;  %s176_s10 = scalar_lea.hbm %s320_s0, 256 }
   0x2   :  { %s13_s7 = sshll.u32 %s224_s6, 4  ;;  %p177_p0 = scmp.ne.s32.totalorder %s320_s0, %s176_s10  ;;  %s14_s7 = int_to_ptr.vmem [resolvable:$true] %s13_s7 }
   0x3   :  { %p180_p1 = scmp.lt.u32.totalorder %s176_s10, %s320_s0 }
   0x5   :  { %p182_p2 = pnand %p180_p1, %p177_p0 }
   0x7   :  { %185 = shalt.err (!%p182_p2)
}
   0x8   :  { %s186_s15 = scalar_lea.vmem %s14_s7, 256  ;;  %p191_p4 = scmp.lt.s32.totalorder %s14_s7, %s14_s7 }
   0x9   :  { %p187_p3 = scmp.ne.s32.totalorder %s14_s7, %s186_s15  ;;  %p192_p5 = scmp.lt.s32.totalorder %s186_s15, %s186_s15 }
   0xb   :  { %p193_p6 = por %p192_p5, %p191_p4 }
   0xd   :  { %p194_p7 = pnand %p193_p6, %p187_p3 }
   0xf   :  { %197 = shalt.err (!%p194_p7)
}
  0x10   :  { %s225_s16 = smov 128   ;;  %s226_s17 = smov 8  }
  0x11   :  { %19 = dma.hbm_to_vmem [thread:$0]  %s320_s0, 256, %s14_s7, [#allocation3], %s225_s16, %s225_s16, %s226_s17  }
  0x12   :  { %220 = dma.done.wait [#allocation3], 256  }
  0x13   :  { %221 = vsyncadd [#allocation3], 4294967040  ;;  %v253_v0 = vld [vmem:[#allocation2] sm:$0xff]  ;;  %v255_v1 = vld [vmem:[#allocation2 + $0x8] sm:$0xff]  ;;  %s227_s0 = smov [#allocation5]  }
  0x14   :  { %v258_v2 = vand.u32 2147483647, %v253_v0  ;;  %v93_v3 = vmul.f32 0.15915494, %v253_v0  ;;  %v262_v4 = vand.u32 2147483647, %v255_v1  ;;  %v25_v33 = vmul.f32 %v253_v0, %v253_v0 }
  0x15   :  { %v94_v5 = vmul.f32 0.15915494, %v255_v1  ;;  %v26_v40 = vmul.f32 %v255_v1, %v255_v1  ;;  %vm87_vm2 = vcmp.lt.f32.partialorder %v253_v0, 0.0  ;;  %vm88_vm3 = vcmp.lt.f32.partialorder %v255_v1, 0.0  ;;  %s152_s20 = sshll.u32 %s227_s0, 4  ;;  %s153_s20 = int_to_ptr.vmem [resolvable:$true] %s152_s20 }
  0x16   :  { %v41_v6 = vmax.f32 %v258_v2, 1.0  ;;  %v95_v7 = vadd.f32 0.5, %v93_v3  ;;  %v42_v8 = vmax.f32 %v262_v4, 1.0  ;;  %v27_v43 = vadd.f32 1.0, %v25_v33  ;;  %s198_s21 = scalar_lea.vmem %s153_s20, 256  ;;  %p203_p9 = scmp.lt.s32.totalorder %s153_s20, %s153_s20 }
  0x17   :  { %v96_v9 = vadd.f32 0.5, %v94_v5  ;;  %vm39_vm0 = vcmp.gt.f32.partialorder %v258_v2, 1.0  ;;  %v28_v50 = vadd.f32 1.0, %v26_v40  ;;  %vm40_vm1 = vcmp.gt.f32.partialorder %v262_v4, 1.0  ;;  %p199_p8 = scmp.ne.s32.totalorder %s153_s20, %s198_s21  ;;  %p204_p10 = scmp.lt.s32.totalorder %s198_s21, %s198_s21 }
  0x18   :  { %v97_v10 = vfloor.f32 %v95_v7  ;;  %168 = vrcp.f32 %v41_v6 }
  0x19   :  { %v98_v11 = vfloor.f32 %v96_v9  ;;  %170 = vrcp.f32 %v42_v8  ;;  %p205_p11 = por %p204_p10, %p203_p9 }
  0x1a   :  { %v99_v12 = vmul.f32 6.28125, %v97_v10  ;;  %v103_v13 = vmul.f32 0.0019353072, %v97_v10  ;;  %172 = vrcp.f32 %v27_v43 }
  0x1b   :  { %v100_v14 = vmul.f32 6.28125, %v98_v11  ;;  %v104_v15 = vmul.f32 0.0019353072, %v98_v11  ;;  %174 = vrcp.f32 %v28_v50  ;;  %p206_p12 = pnand %p205_p11, %p199_p8 }
  0x1c   :  { %v101_v16 = vsub.f32 %v253_v0, %v99_v12 }
  0x1d   :  { %v102_v17 = vsub.f32 %v255_v1, %v100_v14 }
  0x1e   :  { %v105_v18 = vsub.f32 %v101_v16, %v103_v13 }
  0x1f   :  { %v106_v19 = vsub.f32 %v102_v17, %v104_v15 }
  0x20   :  { %v269_v20 = vmul.f32 %v105_v18, %v105_v18 }
  0x21   :  { %v271_v21 = vmul.f32 %v106_v19, %v106_v19 }
  0x22   :  { %v109_v22 = vmul.f32 -1.1470745e-11, %v269_v20  ;;  %v169_v23 = vpop.eup %168 }
  0x23   :  { %v110_v24 = vmul.f32 -1.1470745e-11, %v271_v21  ;;  %v45_v25 = vmul.f32 %v169_v23, %v41_v6  ;;  %v171_v27 = vpop.eup %170 }
  0x24   :  { %v111_v26 = vadd.f32 2.0876756e-09, %v109_v22  ;;  %v46_v31 = vmul.f32 %v171_v27, %v42_v8  ;;  %v173_v10 = vpop.eup %172 }
  0x25   :  { %v112_v28 = vadd.f32 2.0876756e-09, %v110_v24  ;;  %v47_v29 = vsub.f32 2.0, %v45_v25  ;;  %v175_v14 = vpop.eup %174  ;;  %v31_v15 = vmul.f32 %v173_v10, %v27_v43 }
  0x26   :  { %v113_v30 = vmul.f32 %v111_v26, %v269_v20  ;;  %v48_v36 = vsub.f32 2.0, %v46_v31  ;;  %v32_v22 = vmul.f32 %v175_v14, %v28_v50 }
  0x27   :  { %v114_v32 = vmul.f32 %v112_v28, %v271_v21  ;;  %v49_v34 = vmul.f32 %v169_v23, %v47_v29  ;;  %v33_v25 = vsub.f32 2.0, %v31_v15 }
  0x28   :  { %v115_v35 = vadd.f32 -2.755732e-07, %v113_v30  ;;  %v50_v41 = vmul.f32 %v171_v27, %v48_v36  ;;  %v34_v30 = vsub.f32 2.0, %v32_v22 }
  0x29   :  { %v116_v37 = vadd.f32 -2.755732e-07, %v114_v32  ;;  %v51_v38 = vmul.f32 %v49_v34, %v41_v6  ;;  %v35_v33 = vmul.f32 %v173_v10, %v33_v25 }
  0x2a   :  { %v117_v39 = vmul.f32 %v115_v35, %v269_v20  ;;  %v52_v46 = vmul.f32 %v50_v41, %v42_v8 }
  0x2b   :  { %v118_v42 = vmul.f32 %v116_v37, %v271_v21  ;;  %v53_v44 = vsub.f32 2.0, %v51_v38  ;;  %v36_v38 = vmul.f32 %v175_v14, %v34_v30  ;;  %v139_v43 = vmul.f32 0.01, %v35_v33 }
  0x2c   :  { %v119_v45 = vadd.f32 2.4801588e-05, %v117_v39  ;;  %v54_v51 = vsub.f32 2.0, %v52_v46 }
  0x2d   :  { %v120_v47 = vadd.f32 2.4801588e-05, %v118_v42  ;;  %v55_v48 = vmul.f32 %v53_v44, %v49_v34 }
  0x2e   :  { %v121_v49 = vmul.f32 %v119_v45, %v269_v20  ;;  %v56_v54 = vmul.f32 %v54_v51, %v50_v41 }
  0x2f   :  { %v122_v52 = vmul.f32 %v120_v47, %v271_v21  ;;  %v57_v53 = vsel %vm39_vm0, %v55_v48, %v258_v2  ;;  %v140_v48 = vmul.f32 0.01, %v36_v38 }
  0x30   :  { %v59_v55 = vmul.f32 %v57_v53, %v57_v53  ;;  %v123_v56 = vadd.f32 -0.0013888889, %v121_v49  ;;  %v58_v57 = vsel %vm40_vm1, %v56_v54, %v262_v4 }
  0x31   :  { %v60_v59 = vmul.f32 %v58_v57, %v58_v57  ;;  %v124_v60 = vadd.f32 -0.0013888889, %v122_v52 }
  0x32   :  { %v61_v58 = vmul.f32 -0.003730974, %v59_v55  ;;  %v125_v62 = vmul.f32 %v123_v56, %v269_v20 }
  0x33   :  { %v62_v63 = vmul.f32 -0.003730974, %v60_v59  ;;  %v126_v6 = vmul.f32 %v124_v60, %v271_v21 }
  0x34   :  { %v63_v61 = vadd.f32 0.016760072, %v61_v58  ;;  %v127_v8 = vadd.f32 0.041666668, %v125_v62 }
  0x35   :  { %v64_v5 = vadd.f32 0.016760072, %v62_v63  ;;  %v128_v13 = vadd.f32 0.041666668, %v126_v6 }
  0x36   :  { %v65_v3 = vmul.f32 %v63_v61, %v59_v55  ;;  %v129_v17 = vmul.f32 %v127_v8, %v269_v20 }
  0x37   :  { %v66_v9 = vmul.f32 %v64_v5, %v60_v59  ;;  %v130_v24 = vmul.f32 %v128_v13, %v271_v21 }
  0x38   :  { %v67_v7 = vadd.f32 -0.037061732, %v65_v3  ;;  %v131_v27 = vadd.f32 -0.5, %v129_v17 }
  0x39   :  { %v68_v12 = vadd.f32 -0.037061732, %v66_v9  ;;  %v132_v32 = vadd.f32 -0.5, %v130_v24 }
  0x3a   :  { %v69_v11 = vmul.f32 %v67_v7, %v59_v55  ;;  %v133_v35 = vmul.f32 %v131_v27, %v269_v20 }
  0x3b   :  { %v70_v18 = vmul.f32 %v68_v12, %v60_v59  ;;  %v134_v40 = vmul.f32 %v132_v32, %v271_v21 }
  0x3c   :  { %v71_v16 = vadd.f32 0.0616068, %v69_v11  ;;  %v135_v42 = vadd.f32 1.0, %v133_v35 }
  0x3d   :  { %v72_v23 = vadd.f32 0.0616068, %v70_v18  ;;  %v136_v47 = vadd.f32 1.0, %v134_v40 }
  0x3e   :  { %v73_v19 = vmul.f32 %v71_v16, %v59_v55  ;;  %v141_v20 = vmul.f32 %v139_v43, %v135_v42 }
  0x3f   :  { %v74_v28 = vmul.f32 %v72_v23, %v60_v59 }
  0x40   :  { %v75_v26 = vadd.f32 -0.10587734, %v73_v19 }
  0x41   :  { %v76_v31 = vadd.f32 -0.10587734, %v74_v28 }
  0x42   :  { %v77_v29 = vmul.f32 %v75_v26, %v59_v55 }
  0x43   :  { %v78_v36 = vmul.f32 %v76_v31, %v60_v59 }
  0x44   :  { %v79_v34 = vadd.f32 0.31830266, %v77_v29 }
  0x45   :  { %v80_v39 = vadd.f32 0.31830266, %v78_v36 }
  0x46   :  { %v81_v37 = vmul.f32 %v79_v34, %v57_v53  ;;  %v142_v53 = vmul.f32 %v140_v48, %v136_v47 }
  0x47   :  { %v82_v44 = vmul.f32 %v80_v39, %v58_v57 }
  0x48   :  { %v83_v41 = vsub.f32 0.5, %v81_v37 }
  0x49   :  { %v84_v46 = vsub.f32 0.5, %v82_v44 }
  0x4a   :  { %v85_v45 = vsel %vm39_vm0, %v83_v41, %v81_v37 }
  0x4b   :  { %v89_v49 = vsub.f32 0.0, %v85_v45  ;;  %v86_v50 = vsel %vm40_vm1, %v84_v46, %v82_v44 }
  0x4c   :  { %v90_v51 = vsub.f32 0.0, %v86_v50 }
  0x4d   :  { %v91_v21 = vsel %vm87_vm2, %v89_v49, %v85_v45 }
  0x4e   :  { %v137_v52 = vadd.f32 0.5, %v91_v21  ;;  %v92_v54 = vsel %vm88_vm3, %v90_v51, %v86_v50 }
  0x4f   :  { %v138_v2 = vadd.f32 0.5, %v92_v54 }
  0x50   :  { %v143_v0 = vadd.f32 %v141_v20, %v137_v52 }
  0x51   :  { %v144_v55 = vadd.f32 %v142_v53, %v138_v2 }
  0x52   :  { %145 = vst [vmem:[#allocation5] sm:$0xff] %v143_v0 }
  0x53   :  { %146 = vst [vmem:[#allocation5 + $0x8] sm:$0xff] %v144_v55 }
  0x54   :  { %209 = shalt.err (!%p206_p12)
}
  0x55   :  { %s210_s24 = scalar_lea.hbm %s321_s1, 256 }
  0x56   :  { %p211_p13 = scmp.ne.s32.totalorder %s321_s1, %s210_s24  ;;  %p214_p0 = scmp.lt.u32.totalorder %s210_s24, %s321_s1 }
  0x58   :  { %p216_p1 = pnand %p214_p0, %p211_p13 }
  0x5a   :  { %219 = shalt.err (!%p216_p1)
}
  0x5b   :  { %158 = dma.vmem_to_hbm [thread:$0]  %s153_s20, 256, %s321_s1, [#allocation4], %s225_s16, %s225_s16, %s226_s17  }
  0x5c   :  { %222 = dma.done.wait [#allocation4], 256  }
  0x5d   :  { %223 = vsyncadd [#allocation4], 4294967040 }
  0x5e   :  { %162 = vsyncpa [#allocation3], 1 }
  0x5f   :  { %163 = vsyncpa [#allocation4], 1 }

</bundles_post_ra>
